<compile_context>
chip_gen: v7x
topology: tpu7x:2x2x1
jax: 0.10.0
libtpu: 0.0.40
codegen_flags: <defaults>
</compile_context>

<pallas_src>
import math
import functools

import jax
import jax.numpy as jnp
from jax import lax
from jax.experimental import pallas as pl
from jax.experimental.pallas import tpu as pltpu


def _attn_kernel(x_ref, gb_ref, wqkv_ref, wo3_ref, o_ref, *,
                 slen, num_head, dim_head, eps):
    rows, in_dim = x_ref.shape            # rows = b_tile * slen (batch-major rows)
    H, D = num_head, dim_head
    HD = H * D
    b_tile = rows // slen
    G = b_tile * H                        # (head, batch) groups, head-major

    x = x_ref[...].astype(jnp.float32)    # (rows, in_dim)

    # ---- LayerNorm over the feature dim (eps=1e-5, affine) ----
    mu = jnp.mean(x, axis=-1, keepdims=True)
    var = jnp.mean(jnp.square(x - mu), axis=-1, keepdims=True)
    xn = (x - mu) * lax.rsqrt(var + eps)
    gb = gb_ref[...]                      # (2, in_dim) f32: [gamma; beta]
    xn = xn * gb[0:1, :] + gb[1:2, :]

    # ---- slow_net: one fused QKV GEMM (bf16 operands, f32 accumulation).
    # Weight columns ordered [q_h0..q_h{H-1} | k_h0.. | v_h0..]; the 1/sqrt(D)
    # attention scale is pre-folded into the q columns.
    qkv = jnp.dot(xn.astype(jnp.bfloat16), wqkv_ref[...],
                  preferred_element_type=jnp.float32)      # (rows, 3*H*D)

    # ---- regroup into (G, S, D), head-major groups (g = h*b_tile + b).
    # Only 3*H static lane slices (independent of b_tile); everything else is
    # leading-dim reshape/stack (no per-batch marshaling, no concatenates).
    def grouped(base):
        parts = [qkv[:, base + h * D: base + (h + 1) * D].reshape(b_tile, slen, D)
                 for h in range(H)]
        return jnp.stack(parts, axis=0).reshape(G, slen, D)   # f32

    q = grouped(0)
    k = grouped(HD)
    v = grouped(2 * HD)

    # ---- scores for all (head, batch) groups in one batched einsum (f32:
    # these matmuls are tiny and latency-bound; bf16 casts would only add
    # VPU pack passes). ----
    s = jnp.einsum('gid,gjd->gij', q, k,
                   preferred_element_type=jnp.float32)     # (G, S, S)

    # causal mask: query i attends to keys j <= i. Large finite negative is
    # NaN-safe even if a row were ever fully masked.
    row_i = lax.broadcasted_iota(jnp.int32, (slen, slen), 0)
    col_j = lax.broadcasted_iota(jnp.int32, (slen, slen), 1)
    s = jnp.where((col_j > row_i)[None], jnp.float32(-1e30), s)

    m = jnp.max(s, axis=-1, keepdims=True)
    p = jnp.exp(s - m)
    p = p * pl.reciprocal(jnp.sum(p, axis=-1, keepdims=True), approx=True)

    av = jnp.einsum('gij,gjd->gid', p, v,
                    preferred_element_type=jnp.float32)    # (G, S, D)

    # ---- out_linear: fold the head reduction into H small MXU dots.
    # (G, S, D) -> (H, rows, D) is a leading-dim-only reshape (head-major G);
    # row r = b*slen + s matches the x row ordering of this block.
    av_r = av.astype(jnp.bfloat16).reshape(H, rows, D)
    out = jnp.dot(av_r[0], wo3_ref[0], preferred_element_type=jnp.float32)
    for h in range(1, H):
        out = out + jnp.dot(av_r[h], wo3_ref[h],
                            preferred_element_type=jnp.float32)

    # TODO(synk): nn.Dropout omitted (identity in eval / p=0).
    o_ref[...] = (x + out).astype(o_ref.dtype)             # residual


def pack_attention_params(gamma, beta, w_qkv, w_out, *, num_head, dim_head):
    """One-time weight preprocessing (hoisted out of the forward path)."""
    H, D = num_head, dim_head
    in_dim = gamma.shape[0]
    HD = H * D
    scale = 1.0 / math.sqrt(D)
    # slow_net weight: (H*3*D, in_dim); qkv = xn @ W.T viewed as (.., H, {q,k,v}, D)
    wt = w_qkv.T.reshape(in_dim, H, 3, D)
    wq = wt[:, :, 0, :].reshape(in_dim, HD) * scale        # fold 1/sqrt(D) into Wq
    wk = wt[:, :, 1, :].reshape(in_dim, HD)
    wv = wt[:, :, 2, :].reshape(in_dim, HD)
    wqkv_f = jnp.concatenate([wq, wk, wv], axis=1).astype(jnp.bfloat16)  # (C, 3*H*D)
    wo3 = w_out.T.reshape(H, D, in_dim).astype(jnp.bfloat16)             # (H, D, C)
    gb = jnp.stack([gamma, beta], axis=0).astype(jnp.float32)            # (2, C)
    return gb, wqkv_f, wo3


def _choose_b_tile(bsz, slen, num_head, dim_head, in_dim):
    """Pick batch elements per block: fill the MXU M dim when possible, cap by
    a conservative VMEM budget, and keep >=2 grid steps (v7x megacore) when
    the batch allows."""
    S, H, D, C = slen, num_head, dim_head, in_dim
    # dominant per-batch-element f32 intermediates inside one block
    per_b_words = 2 * H * S * S + S * 3 * H * D + 4 * H * S * D + 2 * S * C
    budget_bytes = 12 << 20                    # fits every chip's scoped VMEM
    max_by_vmem = max(1, budget_bytes // (4 * per_b_words))
    b_tile = min(bsz, max(1, 256 // S), max_by_vmem)
    if bsz >= 2 and bsz // b_tile < 2:
        b_tile = max(1, bsz // 2)              # give the 2nd TC (v7x) work
    while b_tile > 1 and (bsz % b_tile != 0 or (b_tile * S) % 8 != 0):
        b_tile -= 1
    if (b_tile * S) % 8 != 0:
        b_tile = bsz                           # single block == full array dims
    return b_tile


def attention_layer_pallas(x, packed, *, num_head, dim_head, b_tile=None):
    """x: (slen, bsz, in_dim); `packed` = pack_attention_params(...). Returns
    the same shape/dtype as x."""
    gb, wqkv_f, wo3 = packed
    slen, bsz, in_dim = x.shape
    H, D = num_head, dim_head
    HD = H * D

    if b_tile is None:
        b_tile = _choose_b_tile(bsz, slen, H, D, in_dim)
    assert bsz % b_tile == 0
    rows_per_block = b_tile * slen

    # batch-major rows: (slen, bsz, C) -> (bsz*slen, C); rows of one batch are
    # contiguous so a batch tile is a plain row-block.
    x2 = jnp.transpose(x, (1, 0, 2)).reshape(bsz * slen, in_dim)

    kernel = functools.partial(_attn_kernel, slen=slen, num_head=H,
                               dim_head=D, eps=1e-5)

    out2 = pl.pallas_call(
        kernel,
        out_shape=jax.ShapeDtypeStruct((bsz * slen, in_dim), x.dtype),
        grid_spec=pltpu.PrefetchScalarGridSpec(
            num_scalar_prefetch=0,
            grid=(bsz // b_tile,),
            in_specs=[
                pl.BlockSpec((rows_per_block, in_dim), lambda i: (i, 0)),  # x rows
                pl.BlockSpec((2, in_dim), lambda i: (0, 0)),               # gamma/beta
                pl.BlockSpec((in_dim, 3 * HD), lambda i: (0, 0)),          # fused Wqkv
                pl.BlockSpec((H, D, in_dim), lambda i: (0, 0, 0)),         # Wout (H,D,C)
            ],
            out_specs=pl.BlockSpec((rows_per_block, in_dim), lambda i: (i, 0)),
        ),
        compiler_params=pltpu.CompilerParams(
            dimension_semantics=("parallel",),      # megacore-friendly on v7x
            vmem_limit_bytes=32 * 1024 * 1024),     # raise v5e's 16 MiB default
    )(x2, gb, wqkv_f, wo3)

    return jnp.transpose(out2.reshape(bsz, slen, in_dim), (1, 0, 2))


def attention_layer_ref(x, gamma, beta, w_qkv, w_out, *, num_head, dim_head):
    """Pure-JAX f32 reference mirroring the PyTorch forward exactly."""
    slen, bsz, in_dim = x.shape
    D = dim_head
    mu = x.mean(-1, keepdims=True)
    var = ((x - mu) ** 2).mean(-1, keepdims=True)
    xn = (x - mu) / jnp.sqrt(var + 1e-5) * gamma + beta
    qkv = xn @ w_qkv.T
    qkv = qkv.reshape(slen, bsz, num_head, 3 * D)
    q, k, v = qkv[..., :D], qkv[..., D:2 * D], qkv[..., 2 * D:]
    scores = jnp.einsum('ibnd,jbnd->ijbn', q, k) / math.sqrt(D)
    mask = jnp.triu(jnp.ones((slen, slen), bool), k=1)
    scores = jnp.where(mask[:, :, None, None], -jnp.inf, scores)
    prob = jax.nn.softmax(scores, axis=1)
    vec = jnp.einsum('ijbn,jbnd->ibnd', prob, v)
    out = vec.reshape(slen, bsz, num_head * D) @ w_out.T
    return x + out


if __name__ == "__main__":
    # Small shapes consistent with the module
    slen, bsz, in_dim = 8, 2, 32
    num_head, dim_head = 2, 16
    dropout = 0.0  # eval / identity

    key = jax.random.PRNGKey(0)
    kx, kqkv, kout = jax.random.split(key, 3)

    x = jax.random.normal(kx, (slen, bsz, in_dim), dtype=jnp.float32)

    # Deterministic parameter init (shapes from __init__)
    w_qkv = jax.random.normal(kqkv, (num_head * 3 * dim_head, in_dim),
                              dtype=jnp.float32) * (1.0 / math.sqrt(in_dim))
    w_out = jax.random.normal(kout, (in_dim, num_head * dim_head),
                              dtype=jnp.float32) * (1.0 / math.sqrt(num_head * dim_head))
    gamma = jnp.ones((in_dim,), jnp.float32)
    beta = jnp.zeros((in_dim,), jnp.float32)

    # Pack weights ONCE (hoisted out of the forward path).
    packed = jax.tree_util.tree_map(jax.block_until_ready,
                                    pack_attention_params(
                                        gamma, beta, w_qkv, w_out,
                                        num_head=num_head, dim_head=dim_head))

    out = attention_layer_pallas(x, packed, num_head=num_head, dim_head=dim_head)
    out = jax.block_until_ready(out)

    ref = attention_layer_ref(x, gamma, beta, w_qkv, w_out,
                              num_head=num_head, dim_head=dim_head)
    assert out.shape == (slen, bsz, in_dim)
    # bf16 MXU operands + approx reciprocal => bf16-level tolerance.
    assert jnp.allclose(out, ref, atol=5e-2, rtol=5e-2), \
        f"max err {jnp.max(jnp.abs(out - ref))}"

    print("KERNEL_OK")
</pallas_src>

<mosaic_0001>
module attributes {stable_mosaic.version = 11 : i64} {
  func.func @_attn_kernel(%arg0: i32, %arg1: memref<8x32xf32, #tpu.memory_space<vmem>>, %arg2: memref<2x32xf32, #tpu.memory_space<vmem>>, %arg3: memref<32x96xbf16, #tpu.memory_space<vmem>>, %arg4: memref<2x16x32xbf16, #tpu.memory_space<vmem>>, %arg5: memref<8x32xf32, #tpu.memory_space<vmem>>) attributes {dimension_semantics = [#tpu.dimension_semantics<parallel>], iteration_bounds = array<i64: 2>, scalar_prefetch = 0 : i64, scratch_operands = 0 : i64, tpu.core_type = #tpu.core_type<tc>, window_params = [{transform_indices = @transform_0, window_bounds = array<i64: 8, 32>}, {pipeline_mode = #tpu.pipeline_mode<synchronous>, transform_indices = @transform_1, window_bounds = array<i64: 2, 32>}, {pipeline_mode = #tpu.pipeline_mode<synchronous>, transform_indices = @transform_2, window_bounds = array<i64: 32, 96>}, {pipeline_mode = #tpu.pipeline_mode<synchronous>, transform_indices = @transform_3, window_bounds = array<i64: 2, 16, 32>}, {transform_indices = @transform_4, window_bounds = array<i64: 8, 32>}]} {
    %c0 = arith.constant 0 : index
    %c0_0 = arith.constant 0 : index
    %0 = vector.load %arg1[%c0, %c0_0] : memref<8x32xf32, #tpu.memory_space<vmem>>, vector<8x32xf32>
    %cst = arith.constant dense<0.000000e+00> : vector<8xf32>
    %1 = vector.multi_reduction <add>, %0, %cst [1] : vector<8x32xf32> to vector<8xf32>
    %2 = vector.shape_cast %1 : vector<8xf32> to vector<8x1xf32>
    %cst_1 = arith.constant 3.200000e+01 : f32
    %3 = vector.broadcast %cst_1 : f32 to vector<8x1xf32>
    %4 = arith.divf %2, %3 : vector<8x1xf32>
    %5 = vector.broadcast %4 : vector<8x1xf32> to vector<8x32xf32>
    %6 = arith.subf %0, %5 : vector<8x32xf32>
    %7 = arith.mulf %6, %6 : vector<8x32xf32>
    %cst_2 = arith.constant dense<0.000000e+00> : vector<8xf32>
    %8 = vector.multi_reduction <add>, %7, %cst_2 [1] : vector<8x32xf32> to vector<8xf32>
    %9 = vector.shape_cast %8 : vector<8xf32> to vector<8x1xf32>
    %cst_3 = arith.constant 3.200000e+01 : f32
    %10 = vector.broadcast %cst_3 : f32 to vector<8x1xf32>
    %11 = arith.divf %9, %10 : vector<8x1xf32>
    %12 = vector.broadcast %4 : vector<8x1xf32> to vector<8x32xf32>
    %13 = arith.subf %0, %12 : vector<8x32xf32>
    %cst_4 = arith.constant 9.99999974E-6 : f32
    %14 = vector.broadcast %cst_4 : f32 to vector<8x1xf32>
    %15 = arith.addf %11, %14 : vector<8x1xf32>
    %16 = math.rsqrt %15 : vector<8x1xf32>
    %17 = vector.broadcast %16 : vector<8x1xf32> to vector<8x32xf32>
    %18 = arith.mulf %13, %17 : vector<8x32xf32>
    %c0_5 = arith.constant 0 : index
    %c0_6 = arith.constant 0 : index
    %19 = vector.load %arg2[%c0_5, %c0_6] : memref<2x32xf32, #tpu.memory_space<vmem>>, vector<2x32xf32>
    %20 = vector.extract_strided_slice %19 {offsets = [0, 0], sizes = [1, 32], strides = [1, 1]} : vector<2x32xf32> to vector<1x32xf32>
    %21 = vector.broadcast %20 : vector<1x32xf32> to vector<8x32xf32>
    %22 = arith.mulf %18, %21 : vector<8x32xf32>
    %23 = vector.extract_strided_slice %19 {offsets = [1, 0], sizes = [1, 32], strides = [1, 1]} : vector<2x32xf32> to vector<1x32xf32>
    %24 = vector.broadcast %23 : vector<1x32xf32> to vector<8x32xf32>
    %25 = arith.addf %22, %24 : vector<8x32xf32>
    %26 = arith.truncf %25 : vector<8x32xf32> to vector<8x32xbf16>
    %c0_7 = arith.constant 0 : index
    %c0_8 = arith.constant 0 : index
    %27 = vector.load %arg3[%c0_7, %c0_8] : memref<32x96xbf16, #tpu.memory_space<vmem>>, vector<32x96xbf16>
    %cst_9 = arith.constant dense<0.000000e+00> : vector<8x96xf32>
    %28 = tpu.matmul %26, %27, %cst_9 {dimension_numbers = #tpu.dot_dimension_numbers<[1], [0], [0], [1], [0, 0, 1, 1], [], []>} : vector<8x32xbf16>, vector<32x96xbf16>, vector<8x96xf32> -> vector<8x96xf32>
    %29 = vector.extract_strided_slice %28 {offsets = [0, 0], sizes = [8, 16], strides = [1, 1]} : vector<8x96xf32> to vector<8x16xf32>
    %30 = vector.shape_cast %29 : vector<8x16xf32> to vector<1x8x16xf32>
    %31 = vector.extract_strided_slice %28 {offsets = [0, 16], sizes = [8, 16], strides = [1, 1]} : vector<8x96xf32> to vector<8x16xf32>
    %32 = vector.shape_cast %31 : vector<8x16xf32> to vector<1x8x16xf32>
    %33 = vector.shape_cast %30 : vector<1x8x16xf32> to vector<1x1x8x16xf32>
    %34 = vector.shape_cast %32 : vector<1x8x16xf32> to vector<1x1x8x16xf32>
    %35 = tpu.concatenate %33, %34 in 0 : vector<1x1x8x16xf32>, vector<1x1x8x16xf32> -> vector<2x1x8x16xf32>
    %36 = vector.shape_cast %35 : vector<2x1x8x16xf32> to vector<2x8x16xf32>
    %37 = vector.extract_strided_slice %28 {offsets = [0, 32], sizes = [8, 16], strides = [1, 1]} : vector<8x96xf32> to vector<8x16xf32>
    %38 = vector.shape_cast %37 : vector<8x16xf32> to vector<1x8x16xf32>
    %39 = vector.extract_strided_slice %28 {offsets = [0, 48], sizes = [8, 16], strides = [1, 1]} : vector<8x96xf32> to vector<8x16xf32>
    %40 = vector.shape_cast %39 : vector<8x16xf32> to vector<1x8x16xf32>
    %41 = vector.shape_cast %38 : vector<1x8x16xf32> to vector<1x1x8x16xf32>
    %42 = vector.shape_cast %40 : vector<1x8x16xf32> to vector<1x1x8x16xf32>
    %43 = tpu.concatenate %41, %42 in 0 : vector<1x1x8x16xf32>, vector<1x1x8x16xf32> -> vector<2x1x8x16xf32>
    %44 = vector.shape_cast %43 : vector<2x1x8x16xf32> to vector<2x8x16xf32>
    %45 = vector.extract_strided_slice %28 {offsets = [0, 64], sizes = [8, 16], strides = [1, 1]} : vector<8x96xf32> to vector<8x16xf32>
    %46 = vector.shape_cast %45 : vector<8x16xf32> to vector<1x8x16xf32>
    %47 = vector.extract_strided_slice %28 {offsets = [0, 80], sizes = [8, 16], strides = [1, 1]} : vector<8x96xf32> to vector<8x16xf32>
    %48 = vector.shape_cast %47 : vector<8x16xf32> to vector<1x8x16xf32>
    %49 = vector.shape_cast %46 : vector<1x8x16xf32> to vector<1x1x8x16xf32>
    %50 = vector.shape_cast %48 : vector<1x8x16xf32> to vector<1x1x8x16xf32>
    %51 = tpu.concatenate %49, %50 in 0 : vector<1x1x8x16xf32>, vector<1x1x8x16xf32> -> vector<2x1x8x16xf32>
    %52 = vector.shape_cast %51 : vector<2x1x8x16xf32> to vector<2x8x16xf32>
    "tpu.trace_start"() <{level = 10 : i32, message = "gid,gjd->gij"}> : () -> ()
    %cst_10 = arith.constant dense<0.000000e+00> : vector<2x8x8xf32>
    %53 = tpu.matmul %36, %44, %cst_10 {dimension_numbers = #tpu.dot_dimension_numbers<[2], [2], [1], [1], [0, 0, 0, 1, 1, 1], [0], [0]>} : vector<2x8x16xf32>, vector<2x8x16xf32>, vector<2x8x8xf32> -> vector<2x8x8xf32>
    "tpu.trace_stop"() : () -> ()
    %54 = tpu.iota {dimensions = array<i32: 0>} : vector<8x8xi32>
    %55 = tpu.iota {dimensions = array<i32: 1>} : vector<8x8xi32>
    %56 = arith.cmpi sgt, %55, %54 : vector<8x8xi32>
    %57 = vector.shape_cast %56 : vector<8x8xi1> to vector<1x8x8xi1>
    %cst_11 = arith.constant -1.000000e+30 : f32
    %58 = vector.shape_cast %57 : vector<1x8x8xi1> to vector<1x8x8xi1>
    %59 = vector.broadcast %58 : vector<1x8x8xi1> to vector<2x8x8xi1>
    %60 = vector.broadcast %cst_11 : f32 to vector<2x8x8xf32>
    %61 = arith.select %59, %60, %53 : vector<2x8x8xi1>, vector<2x8x8xf32>
    %cst_12 = arith.constant dense<0xFF800000> : vector<2x8xf32>
    %62 = vector.multi_reduction <maximumf>, %61, %cst_12 [2] : vector<2x8x8xf32> to vector<2x8xf32>
    %63 = vector.shape_cast %62 : vector<2x8xf32> to vector<2x8x1xf32>
    %64 = vector.broadcast %63 : vector<2x8x1xf32> to vector<2x8x8xf32>
    %65 = arith.subf %61, %64 : vector<2x8x8xf32>
    %66 = math.exp %65 : vector<2x8x8xf32>
    %cst_13 = arith.constant dense<0.000000e+00> : vector<2x8xf32>
    %67 = vector.multi_reduction <add>, %66, %cst_13 [2] : vector<2x8x8xf32> to vector<2x8xf32>
    %68 = vector.shape_cast %67 : vector<2x8xf32> to vector<2x8x1xf32>
    %69 = tpu.reciprocal %68 {approx = true} : vector<2x8x1xf32> -> vector<2x8x1xf32>
    %70 = vector.broadcast %69 : vector<2x8x1xf32> to vector<2x8x8xf32>
    %71 = arith.mulf %66, %70 : vector<2x8x8xf32>
    "tpu.trace_start"() <{level = 10 : i32, message = "gij,gjd->gid"}> : () -> ()
    %cst_14 = arith.constant dense<0.000000e+00> : vector<2x8x16xf32>
    %72 = tpu.matmul %71, %52, %cst_14 {dimension_numbers = #tpu.dot_dimension_numbers<[2], [1], [1], [2], [0, 0, 0, 1, 1, 2], [0], [0]>} : vector<2x8x8xf32>, vector<2x8x16xf32>, vector<2x8x16xf32> -> vector<2x8x16xf32>
    "tpu.trace_stop"() : () -> ()
    %73 = arith.truncf %72 : vector<2x8x16xf32> to vector<2x8x16xbf16>
    %74 = vector.extract_strided_slice %73 {offsets = [0, 0, 0], sizes = [1, 8, 16], strides = [1, 1, 1]} : vector<2x8x16xbf16> to vector<1x8x16xbf16>
    %75 = vector.shape_cast %74 : vector<1x8x16xbf16> to vector<8x16xbf16>
    %c0_15 = arith.constant 0 : index
    %c0_16 = arith.constant 0 : index
    %c0_17 = arith.constant 0 : index
    %76 = vector.load %arg4[%c0_15, %c0_16, %c0_17] : memref<2x16x32xbf16, #tpu.memory_space<vmem>>, vector<1x16x32xbf16>
    %77 = vector.shape_cast %76 : vector<1x16x32xbf16> to vector<16x32xbf16>
    %cst_18 = arith.constant dense<0.000000e+00> : vector<8x32xf32>
    %78 = tpu.matmul %75, %77, %cst_18 {dimension_numbers = #tpu.dot_dimension_numbers<[1], [0], [0], [1], [0, 0, 1, 1], [], []>} : vector<8x16xbf16>, vector<16x32xbf16>, vector<8x32xf32> -> vector<8x32xf32>
    %79 = vector.extract_strided_slice %73 {offsets = [1, 0, 0], sizes = [1, 8, 16], strides = [1, 1, 1]} : vector<2x8x16xbf16> to vector<1x8x16xbf16>
    %80 = vector.shape_cast %79 : vector<1x8x16xbf16> to vector<8x16xbf16>
    %c1 = arith.constant 1 : index
    %c0_19 = arith.constant 0 : index
    %c0_20 = arith.constant 0 : index
    %81 = vector.load %arg4[%c1, %c0_19, %c0_20] : memref<2x16x32xbf16, #tpu.memory_space<vmem>>, vector<1x16x32xbf16>
    %82 = vector.shape_cast %81 : vector<1x16x32xbf16> to vector<16x32xbf16>
    %cst_21 = arith.constant dense<0.000000e+00> : vector<8x32xf32>
    %83 = tpu.matmul %80, %82, %cst_21 {dimension_numbers = #tpu.dot_dimension_numbers<[1], [0], [0], [1], [0, 0, 1, 1], [], []>} : vector<8x16xbf16>, vector<16x32xbf16>, vector<8x32xf32> -> vector<8x32xf32>
    %84 = arith.addf %78, %83 : vector<8x32xf32>
    %85 = arith.addf %0, %84 : vector<8x32xf32>
    %c0_22 = arith.constant 0 : index
    %c0_23 = arith.constant 0 : index
    %86 = vector.load %arg5[%c0_22, %c0_23] : memref<8x32xf32, #tpu.memory_space<vmem>>, vector<8x32xf32>
    tpu.vector_store %arg5[%c0_22, %c0_23], %85 {strides = array<i32>} : memref<8x32xf32, #tpu.memory_space<vmem>>, vector<8x32xf32>,
    return
  }
  func.func @transform_0(%arg0: i32) -> (i32, i32) {
    %c0_i32 = arith.constant 0 : i32
    %c0_i32_0 = arith.constant 0 : i32
    return %arg0, %c0_i32 : i32, i32
  }
  func.func @transform_1(%arg0: i32) -> (i32, i32) {
    %c0_i32 = arith.constant 0 : i32
    %c0_i32_0 = arith.constant 0 : i32
    %c0_i32_1 = arith.constant 0 : i32
    return %c0_i32, %c0_i32_0 : i32, i32
  }
  func.func @transform_2(%arg0: i32) -> (i32, i32) {
    %c0_i32 = arith.constant 0 : i32
    %c0_i32_0 = arith.constant 0 : i32
    %c0_i32_1 = arith.constant 0 : i32
    return %c0_i32, %c0_i32_0 : i32, i32
  }
  func.func @transform_3(%arg0: i32) -> (i32, i32, i32) {
    %c0_i32 = arith.constant 0 : i32
    %c0_i32_0 = arith.constant 0 : i32
    %c0_i32_1 = arith.constant 0 : i32
    %c0_i32_2 = arith.constant 0 : i32
    return %c0_i32, %c0_i32_0, %c0_i32_1 : i32, i32, i32
  }
  func.func @transform_4(%arg0: i32) -> (i32, i32) {
    %c0_i32 = arith.constant 0 : i32
    %c0_i32_0 = arith.constant 0 : i32
    return %arg0, %c0_i32 : i32, i32
  }
}

</mosaic_0001>

<bundles_post_ra>
// kernel: tpu_custom_call.1
= control target key start
LH: loop header
LB: loop body
LE: loop exit
PB: predicated region body
PF: predicated region fallthrough
CT: control target
= control target key end

     0   :  { %9 = vsyncpa [#allocation3], 0  ;;  %s1525_s0 = inlined_call_operand.hbm [shape: f32[16,32], index: 0, kind: input, shape index: {}]   ;;  %s1526_s1 = inlined_call_operand.vmem [shape: f32[2,32], index: 1, kind: input, shape index: {}]   ;;  %s1527_s2 = inlined_call_operand.hbm [shape: bf16[32,96], index: 2, kind: input, shape index: {}]   ;;  %s1528_s3 = inlined_call_operand.hbm [shape: bf16[2,16,32], index: 3, kind: input, shape index: {}]   ;;  %s1529_s4 = inlined_call_operand.hbm [shape: f32[16,32], index: 4, kind: output, shape index: {}]  }
   0x1   :  { %11 = vsyncpa [#allocation3 + $0x1], 0 }
   0x2   :  { %12 = vsyncpa [#allocation6], 0 }
   0x3   :  { %13 = vsyncpa [#allocation4], 0 }
   0x4   :  { %15 = vsyncpa [#allocation4 + $0x1], 0  ;;  %s1246_s15 = smov 0   ;;  %s1248_s16 = smov 0  }
   0x5   :  { %s1250_s17 = smov 0   ;;  %s1252_s18 = smov 0  }
   0x6 LB: > { %s1267_s19 = sadd.s32 4294967295, %s1208_s18   ;;  %s880_s20 = sadd.s32 4294967294, %s1208_s18   ;;  %s1208_s18 = sphi %s1252_s18, %s1549_s18   ;;  %s1204_s17 = sphi %s1250_s17, %s1548_s17   ;;  %s1200_s16 = sphi %s1248_s16, %s1547_s16   ;;  %s1196_s15 = sphi %s1246_s15, %s1546_s15  }
   0x7   : > { %p41_p0 = scmp.ne.s32.totalorder %s1200_s16, %s1196_s15  ;;  %p1530_p1 = scmp.eq.s32.totalorder %s1267_s19, 0 }
   0x8   : > { %p134_p3 = scmp.eq.s32.totalorder %s880_s20, 1  ;;  %p881_p5 = scmp.ge.s32.totalorder %s1208_s18, 1 }
   0x9   : > { %p1276_p4 = por %p1530_p1, %p41_p0  ;;  %p141_p7 = scmp.lt.s32.totalorder %s1208_s18, 3 }
   0xa   : > { %p1281_p6 = por %p134_p3, %p41_p0  ;;  %s1210_s24 = smov [#allocation5]  }
   0xb   : > { %s1533_s21 = scalar_select %p1276_p4, 1, 0 }
   0xc   : > { %s1534_s22 = scalar_select %p1281_p6, 1, 0 }
   0xd   : > { %p1286_p8 = pnand %p881_p5, %p141_p7  ;;  %s156_s25 = sshll.u32 %s1210_s24, 4  ;;  %s1290_s25 = int_to_ptr.vmem [resolvable:$true] %s156_s25 }
   0xe   : > { %s1211_s27 = smov [#allocation7]   ;;  %s1052_s5 = scalar_lea.hbm %s1527_s2, 256 }
   0xf   : > { %p976_p9 = pneg %p1286_p8  ;;  %s169_s28 = sshll.u32 %s1211_s27, 4  ;;  %s1301_s28 = int_to_ptr.vmem [resolvable:$true] %s169_s28 }
  0x10   : > { %p1053_p12 = scmp.ne.s32.totalorder %s1527_s2, %s1052_s5  ;;  %p1059_p5 = scmp.lt.u32.totalorder %s1052_s5, %s1527_s2 }
  0x11   : > { %p1297_p11 = pnand %p976_p9, %p1530_p1 }
  0x13   : > { %p1054_p13 = pneg %p1297_p11 }
  0x15   : > { %p1055_p0 = pnand %p1054_p13, %p1053_p12 }
  0x17   : > { %p1056_p3 = pneg %p1055_p0 }
  0x19   : > { %p1061_p7 = pnand %p1059_p5, %p1056_p3 }
  0x1b   : > { %1064 = shalt.err (!%p1061_p7)
}
  0x1c   : > { %s1065_s10 = scalar_lea.vmem %s1290_s25, 256  ;;  %p1073_p2 = scmp.lt.s32.totalorder %s1290_s25, %s1290_s25 }
  0x1d   : > { %p1066_p9 = scmp.ne.s32.totalorder %s1290_s25, %s1065_s10  ;;  %p1074_p12 = scmp.lt.s32.totalorder %s1065_s10, %s1065_s10 }
  0x1f   : > { %p1068_p10 = pnand %p1066_p9, %p1054_p13  ;;  %p1075_p0 = por %p1074_p12, %p1073_p2 }
  0x21   : > { %p1069_p1 = pneg %p1068_p10 }
  0x23   : > { %p1076_p6 = pnand %p1075_p0, %p1069_p1 }
  0x25   : > { %1079 = shalt.err (!%p1076_p6)
}
  0x26   : > { %s1212_s11 = smov 64   ;;  %s1213_s12 = smov 4  }
  0x27   : > { %979 = dma.hbm_to_vmem [thread:$0]  (!%p1297_p11), %s1527_s2, 256, %s1290_s25, [#allocation6], %s1212_s11, %s1212_s11, %s1213_s12  }
  0x28   : > { %s1080_s27 = scalar_lea.hbm %s1528_s3, 256 }
  0x29   : > { %p1081_p2 = scmp.ne.s32.totalorder %s1528_s3, %s1080_s27  ;;  %p1087_p10 = scmp.lt.u32.totalorder %s1080_s27, %s1528_s3 }
  0x2b   : > { %p1083_p1 = pnand %p1081_p2, %p1054_p13 }
  0x2d   : > { %p1084_p6 = pneg %p1083_p1 }
  0x2f   : > { %p1089_p3 = pnand %p1087_p10, %p1084_p6 }
  0x31   : > { %1092 = shalt.err (!%p1089_p3)
}
  0x32   : > { %s1093_s25 = scalar_lea.vmem %s1301_s28, 256  ;;  %p1101_p12 = scmp.lt.s32.totalorder %s1301_s28, %s1301_s28 }
  0x33   : > { %p1094_p5 = scmp.ne.s32.totalorder %s1301_s28, %s1093_s25  ;;  %p1102_p0 = scmp.lt.s32.totalorder %s1093_s25, %s1093_s25 }
  0x35   : > { %p1096_p7 = pnand %p1094_p5, %p1054_p13  ;;  %p1103_p2 = por %p1102_p0, %p1101_p12 }
  0x37   : > { %p1097_p9 = pneg %p1096_p7 }
  0x39   : > { %p1104_p1 = pnand %p1103_p2, %p1097_p9 }
  0x3b   : > { %1107 = shalt.err (!%p1104_p1)
}
  0x3c   : > { %982 = dma.hbm_to_vmem [thread:$0]  (!%p1297_p11), %s1528_s3, 256, %s1301_s28, [#allocation6], %s1212_s11, %s1212_s11, %s1213_s12  }
  0x3d   : > { %s1356_s9 = sadd.s32 1, %s1208_s18   ;;  %s28_s26 = sadd.s32 1, %s1204_s17 }
  0x3e   : > { %s25_s10 = ssub.s32 %s1208_s18, %s1356_s9  ;;  %p35_p13 = scmp.ne.s32.totalorder %s1204_s17, %s1200_s16 }
  0x3f   : > { %p26_p6 = scmp.eq.s32.totalorder %s25_s10, 0  ;;  %p36_p10 = scmp.eq.s32.totalorder %s1208_s18, 0 }
  0x40   : > { %p1537_p3 = scmp.eq.s32.totalorder %s1267_s19, 1  ;;  %p993_p7 = scmp.lt.s32.totalorder %s1208_s18, 2 }
  0x41   : > { %s1372_s14 = scalar_select %p26_p6, %s1204_s17, %s28_s26  }
  0x42   : > { %p1366_p5 = por %p1537_p3, %p35_p13  ;;  %p37_p9 = por %p36_p10, %p35_p13 }
  0x43   : > { %s183_s20 = sand.u32 1, %s1204_s17   ;;  %s886_s28 = sshll.u32 %s1208_s18, 7 }
  0x44   : > { %s1538_s13 = scalar_select %p1366_p5, 1, 0 }
  0x45   : > { %s885_s24 = sshll.u32 %s183_s20, 3  ;;  %s1379_s27 = scalar_lea.hbm %s1525_s0, %s886_s28 }
  0x46   : > { %s187_s29 = scalar_lea.vmem [#allocation2], %s885_s24  ;;  %p1383_p11 = pnand %p993_p7, %p37_p9 }
  0x47   : > { %s194_s30 = sshll.u32 %s187_s29, 4  ;;  %s184_s6 = scalar_lea.sflag [#allocation3], %s183_s20  ;;  %s1381_s30 = int_to_ptr.vmem [resolvable:$true] %s194_s30 }
  0x48   : > { %s1108_s25 = scalar_lea.hbm %s1379_s27, 128  ;;  %p1110_p0 = pneg %p1383_p11 }
  0x49   : > { %p1109_p12 = scmp.ne.s32.totalorder %s1379_s27, %s1108_s25  ;;  %s1113_s26 = scalar_lea.hbm %s1525_s0, 256 }
  0x4a   : > { %p1114_p13 = scmp.lt.u32.totalorder %s1379_s27, %s1525_s0  ;;  %p1115_p6 = scmp.lt.u32.totalorder %s1113_s26, %s1108_s25 }
  0x4b   : > { %p1111_p2 = pnand %p1110_p0, %p1109_p12  ;;  %p1117_p3 = scmp.lt.u32.totalorder %s1108_s25, %s1379_s27 }
  0x4c   : > { %p1116_p10 = por %p1115_p6, %p1114_p13 }
  0x4d   : > { %p1112_p1 = pneg %p1111_p2 }
  0x4e   : > { %p1118_p7 = por %p1117_p3, %p1116_p10 }
  0x50   : > { %p1119_p9 = pnand %p1118_p7, %p1112_p1 }
  0x52   : > { %1122 = shalt.err (!%p1119_p9)
}
  0x53   : > { %s1123_s20 = scalar_lea.vmem %s1381_s30, 128  ;;  %s1214_s28 = smov [#allocation2]  }
  0x54   : > { %p1124_p12 = scmp.ne.s32.totalorder %s1381_s30, %s1123_s20  ;;  %s1128_s11 = sshll.u32 %s1214_s28, 4  ;;  %s1129_s11 = int_to_ptr.vmem [resolvable:$false] %s1128_s11 }
  0x55   : > { %s1130_s12 = scalar_lea.vmem %s1129_s11, 256  ;;  %p1131_p4 = scmp.lt.s32.totalorder %s1381_s30, %s1129_s11 }
  0x56   : > { %p1126_p2 = pnand %p1124_p12, %p1110_p0  ;;  %p1132_p13 = scmp.lt.s32.totalorder %s1130_s12, %s1123_s20 }
  0x58   : > { %p1127_p5 = pneg %p1126_p2  ;;  %p1133_p6 = por %p1132_p13, %p1131_p4 }
  0x5a   : > { %p1134_p10 = pnand %p1133_p6, %p1127_p5 }
  0x5c   : > { %1137 = shalt.err (!%p1134_p10)
}
  0x5d   : > { %986 = dma.hbm_to_vmem [thread:$0]  (!%p1383_p11), %s1379_s27, 128, %s1381_s30, %s184_s6  }
  0x5e   : > { %203 = sbr.rel (%p1286_p8) target bundleno = 1837 (0x72d), region = 36  ;;  %s1415_s29 = sand.u32 (!%p1286_p8), 1, %s1200_s16  }
  0x5f   : > { %s888_s25 = sshll.u32 (!%p1286_p8), %s1415_s29, 3  ;;  %s206_s7 = scalar_lea.sflag (!%p1286_p8), [#allocation3], %s1415_s29 }
  0x60   : > { %s209_s8 = scalar_lea.vmem (!%p1286_p8), [#allocation2], %s888_s25  ;;  %p1540_p4 = scmp.ne.s32.totalorder (!%p1286_p8), %s1533_s21, 0 }
  0x65   : > { %1183 = dma.done.wait (%p1540_p4), %s206_s7, 128  }
  0x66   : > { %1185 = vsyncadd (%p1540_p4), %s206_s7, 4294967168  ;;  %p1541_p5 = scmp.eq.s32.totalorder %s1267_s19, 0 }
  0x68   : > { %1187 = dma.done.wait (%p1541_p5), [#allocation6], 512   ;;  %p1542_p8 = pmov %p1541_p5 }
  0x69   : > { %vm244_vm0 = vcmask 261120   ;;  %v1429_v0 = vld [vmem:[%s209_s8] sm:$0xff]  ;;  %v1038_v7 = vld [vmem:[#allocation5] sm:$0xff]   ;;  %v1215_v8 = vmov 0.0   ;;  %vm1216_vm1 = vmmov 0   ;;  %v1039_v9 = vld [vmem:[#allocation5 + $0x8] sm:$0xff]   ;;  %v260_v12 = vlaneseq }
  0x6a   : > { %1189 = vsyncadd (%p1542_p8), [#allocation6], 4294966784  ;;  %v245_v1 = vsel %vm244_vm0, %v1429_v0, 0.0  ;;  %924 = vmatprep.subr.bf16.mxu0 %v1215_v8  ;;  %928 = vmatprep.mubr.msk.bf16.mxu0 %vm1216_vm1, %v1215_v8  ;;  %v259_v16 = vld [vmem:[%s1526_s1] sm:$0x3]  ;;  %s1217_s27 = smov 112  }
  0x6b   : > { %246 = vadd.xlane.f32.xlu0 %v245_v1  ;;  %925 = vmatpush3.bf16.msra.mxu0 %v1038_v7  ;;  %v261_v14 = vshrl.u32 %v260_v12, 7  ;;  %s1218_s30 = smov 96   ;;  %vm335_vm2 = vcmask 130048   ;;  %v489_v32 = vand.u32 127, %v260_v12  ;;  %vm495_vm4 = vcmask 64512   ;;  %s1219_s5 = smov 64  }
  0x6c   : > { %932 = vmatprep.subr.mxu1 %v1215_v8  ;;  %926 = vmatprep.subr.bf16.mxu0 %v1215_v8  ;;  %v1040_v59 = vld [vmem:[#allocation7] sm:$0xff]   ;;  %v1041_v60 = vld [vmem:[#allocation7 + $0x8] sm:$0xff]   ;;  %s906_s6 = sshll.u32 %s1267_s19, 7  ;;  %s241_s26 = scalar_lea.vmem [#allocation8], %s888_s25 }
  0x6d   : > { %934 = vmatprep.mubr.msk.f32.mxu1 %vm1216_vm1, %v1215_v8  ;;  %v262_v15 = vsub.s32 0, %v261_v14  ;;  %v267_v17 = vsub.s32 1, %v261_v14  ;;  %vm490_vm3 = vcmp.gt.s32.totalorder %v489_v32, %v261_v14  ;;  %s791_s10 = sshll.u32 %s241_s26, 4  ;;  %s1480_s28 = scalar_lea.hbm %s1529_s4, %s906_s6  ;;  %s1482_s10 = int_to_ptr.vmem [resolvable:$true] %s791_s10 }
  0x6e   : > { %s778_s19 = scalar_lea.sflag [#allocation4], %s1415_s29  ;;  %s1138_s11 = scalar_lea.vmem %s1482_s10, 128 }
  0x6f   : > { %927 = vmatpush3.bf16.msra.mxu0 %v1039_v9  ;;  %v263_v18 = vrot.slane %v259_v16, %v262_v15  ;;  %v268_v21 = vrot.slane %v259_v16, %v267_v17  ;;  %p1139_p11 = scmp.ne.s32.totalorder %s1482_s10, %s1138_s11  ;;  %p1543_p0 = scmp.ne.s32.totalorder %s1538_s13, 0 }
  0x70   : > { %947 = vmatprep.subr.mxu0 %v1215_v8  ;;  %s1220_s12 = smov [#allocation8]  }
  0x71   : > { %p1140_p1 = pnand %p1139_p11, %p1543_p0  ;;  %s1142_s25 = sshll.u32 %s1220_s12, 4  ;;  %s1143_s25 = int_to_ptr.vmem [resolvable:$false] %s1142_s25 }
  0x72   : > { %s1144_s7 = scalar_lea.vmem %s1143_s25, 256  ;;  %p1145_p7 = scmp.lt.s32.totalorder %s1482_s10, %s1143_s25 }
  0x73   : > { %p1141_p3 = pneg %p1140_p1  ;;  %p1146_p9 = scmp.lt.s32.totalorder %s1144_s7, %s1138_s11 }
  0x75   : > { %p1147_p12 = por %p1146_p9, %p1145_p7 }
  0x77   : > { %p1148_p2 = pnand %p1147_p12, %p1141_p3 }
  0xf8   : > { %v247_v2 = vpop.xlane.xlu0 %246 }
  0xf9   : > { %v249_v3 = vmul.f32 0.03125, %v247_v2 }
  0xfb   : > { %v250_v4 = vsub.f32 %v1429_v0, %v249_v3 }
  0xfd   : > { %v251_v5 = vmul.f32 %v250_v4, %v250_v4 }
  0xff   : > { %v252_v6 = vsel %vm244_vm0, %v251_v5, 0.0 }
 0x100   : > { %253 = vadd.xlane.f32.xlu0 %v252_v6 }
 0x18d   : > { %v254_v10 = vpop.xlane.xlu0 %253 }
 0x18e   : > { %v255_v11 = vmul.f32 0.03125, %v254_v10 }
 0x190   : > { %v256_v13 = vadd.f32 1e-05, %v255_v11 }
 0x192   : > { %1042 = vrsqrt.f32 %v256_v13 }
 0x19c   : > { %v1043_v19 = vpop.eup %1042 }
 0x19d   : > { %v258_v20 = vmul.f32 %v1043_v19, %v250_v4 }
 0x19f   : > { %v264_v22 = vmul.f32 %v263_v18, %v258_v20 }
 0x1a1   : > { %v269_v23 = vadd.f32 %v268_v21, %v264_v22 }
 0x1a3   : > { %v270_v24 = vpack.c.bf16 %v269_v23, %v269_v23 }
 0x1a5   : > { %929 = vmatmul.mubr.msk.bf16.vlgmr.msra.gmra.mrb[0].mxu0 %vm244_vm0, %v270_v24 }
 0x1a6   : > { %949 = vmatprep.mubr.msk.f32.mxu0 %vm1216_vm1, %v1215_v8 }
 0x278   : > { %v324_v25 = vpop.f32.mrb[0].mxu0 }
 0x279   : > { %331 = vrot.lane.b32.xlu1 %v324_v25, %s1217_s27  ;;  %v930_v26 = vpop.f32.mrb[1].mxu0 }
 0x27a   : > { %v327_v27 = vpop.f32.mrb[2].mxu0 }
 0x27b   : > { %v931_v28 = vpop.f32.mrb[3].mxu0 }
 0x27d   : > { %333 = vrot.lane.b32.xlu1 %v324_v25, %s1218_s30 }
 0x2eb   : > { %v332_v29 = vpop.permute.xlu1 %331 }
 0x2ec   : > { %410 = vrot.lane.b32.xlu0 %v332_v29, %s1218_s30 }
 0x2ef   : > { %v334_v30 = vpop.permute.xlu1 %333 }
 0x2f0   : > { %933 = vmatpush3.xpose.msk.msra.mxu1 %vm335_vm2, %v334_v30 }
 0x2f1   : > { %937 = vmatprep.subr.mxu1 %v1215_v8 }
 0x2f3   : > { %935 = vmatmul.mubr.msk.f32.vlgmr.msra.gmra.mrb[0].mxu1 %vm335_vm2, %v324_v25 }
 0x2f4   : > { %939 = vmatprep.mubr.msk.f32.mxu1 %vm1216_vm1, %v1215_v8 }
 0x35e   : > { %v411_v31 = vpop.permute.xlu0 %410 }
 0x35f   : > { %938 = vmatpush3.xpose.msk.msra.mxu1 %vm335_vm2, %v411_v31 }
 0x360   : > { %942 = vmatprep.subr.mxu1 %v1215_v8 }
 0x362   : > { %940 = vmatmul.mubr.msk.f32.vlgmr.msra.gmra.mrb[2].mxu1 %vm335_vm2, %v332_v29 }
 0x363   : > { %944 = vmatprep.mubr.msk.f32.mxu1 %vm1216_vm1, %v1215_v8 }
 0x3c6   : > { %v406_v33 = vpop.f32.mrb[0].mxu1 }
 0x3c7   : > { %v493_v34 = vsel %vm490_vm3, -1e+30, %v406_v33  ;;  %v936_v35 = vpop.f32.mrb[1].mxu1 }
 0x3c8   : > { %v496_v36 = vsel %vm495_vm4, %v493_v34, -inf }
 0x3c9   : > { %497 = vmax.xlane.f32.xlu1 %v496_v36 }
 0x435   : > { %v482_v37 = vpop.f32.mrb[2].mxu1 }
 0x436   : > { %v494_v38 = vsel %vm490_vm3, -1e+30, %v482_v37  ;;  %v941_v39 = vpop.f32.mrb[3].mxu1 }
 0x437   : > { %v499_v40 = vsel %vm495_vm4, %v494_v38, -inf }
 0x438   : > { %500 = vmax.xlane.f32.xlu0 %v499_v40 }
 0x44e   : > { %594 = vrot.lane.b32.xlu0 %v332_v29, %s1219_s5 }
 0x456   : > { %v498_v41 = vpop.xlane.xlu1 %497 }
 0x457   : > { %v502_v42 = vsub.f32 %v493_v34, %v498_v41 }
 0x459   : > { %v504_v43 = vmul.f32 1.442695, %v502_v42 }
 0x45b   : > { %1044 = vpow2.f32 %v504_v43 }
 0x465   : > { %v1045_v44 = vpop.eup %1044 }
 0x466   : > { %v508_v45 = vsel %vm495_vm4, %v1045_v44, 0.0 }
 0x467   : > { %509 = vadd.xlane.f32.xlu1 %v508_v45 }
 0x4c5   : > { %v501_v46 = vpop.xlane.xlu0 %500 }
 0x4c6   : > { %v503_v47 = vsub.f32 %v494_v38, %v501_v46 }
 0x4c8   : > { %v506_v48 = vmul.f32 1.442695, %v503_v47 }
 0x4c9   : > { %v595_v49 = vpop.permute.xlu0 %594 }
 0x4ca   : > { %1046 = vpow2.f32 %v506_v48  ;;  %948 = vmatpush3.msra.mxu0 %v595_v49 }
 0x4cb   : > { %958 = vmatprep.subr.bf16.mxu0 %v1215_v8 }
 0x4d4   : > { %v1047_v50 = vpop.eup %1046 }
 0x4d5   : > { %v511_v51 = vsel %vm495_vm4, %v1047_v50, 0.0 }
 0x4d6   : > { %512 = vadd.xlane.f32.xlu1 %v511_v51 }
 0x4e7   : > { %518 = vrot.lane.b32.xlu1 %v324_v25, %s1219_s5 }
 0x4f4   : > { %v510_v52 = vpop.xlane.xlu1 %509 }
 0x4f5   : > { %1048 = vrcp.f32 %v510_v52 }
 0x4ff   : > { %v1049_v54 = vpop.eup %1048 }
 0x500   : > { %v516_v55 = vmul.f32 %v1049_v54, %v1045_v44 }
 0x563   : > { %v513_v53 = vpop.xlane.xlu1 %512 }
 0x564   : > { %1050 = vrcp.f32 %v513_v53 }
 0x567   : > { %v519_v56 = vpop.permute.xlu1 %518 }
 0x568   : > { %943 = vmatpush3.msra.mxu1 %v519_v56 }
 0x569   : > { %945 = vmatmul.mubr.msk.f32.vlgmr.msra.gmra.mrb[4].mxu1 %vm495_vm4, %v516_v55  ;;  %952 = vmatprep.subr.bf16.mxu1 %v1215_v8 }
 0x56a   : > { %954 = vmatprep.mubr.msk.bf16.mxu1 %vm1216_vm1, %v1215_v8  ;;  %953 = vmatpush3.bf16.msra.mxu1 %v1041_v60 }
 0x56e   : > { %v1051_v57 = vpop.eup %1050 }
 0x56f   : > { %v517_v58 = vmul.f32 %v1051_v57, %v1047_v50 }
 0x571   : > { %950 = vmatmul.mubr.msk.f32.vlgmr.msra.gmra.mrb[4].mxu0 %vm495_vm4, %v517_v58 }
 0x572   : > { %960 = vmatprep.mubr.msk.bf16.mxu0 %vm1216_vm1, %v1215_v8  ;;  %959 = vmatpush3.bf16.msra.mxu0 %v1040_v59 }
 0x63c   : > { %v590_v61 = vpop.f32.mrb[4].mxu1 }
 0x63d   : > { %v670_v62 = vpack.c.bf16 %v590_v61, %v590_v61  ;;  %v946_v63 = vpop.f32.mrb[5].mxu1 }
 0x63f   : > { %961 = vmatmul.mubr.msk.bf16.vlgmr.msra.gmra.mrb[8].mxu0 %vm335_vm2, %v670_v62 }
 0x644   : > { %v666_v1 = vpop.f32.mrb[4].mxu0 }
 0x645   : > { %v671_v2 = vpack.c.bf16 %v666_v1, %v666_v1  ;;  %v951_v3 = vpop.f32.mrb[5].mxu0 }
 0x647   : > { %955 = vmatmul.mubr.msk.bf16.vlgmr.msra.gmra.mrb[8].mxu1 %vm335_vm2, %v671_v2 }
 0x712   : > { %v769_v4 = vpop.f32.mrb[8].mxu0 }
 0x713   : > { %v962_v5 = vpop.f32.mrb[9].mxu0 }
 0x714   : > { %v772_v6 = vpop.f32.mrb[10].mxu0 }
 0x715   : > { %v963_v7 = vpop.f32.mrb[11].mxu0 }
 0x71a   : > { %v720_v8 = vpop.f32.mrb[8].mxu1 }
 0x71b   : > { %v770_v9 = vadd.f32 %v769_v4, %v720_v8  ;;  %v956_v10 = vpop.f32.mrb[9].mxu1 }
 0x71c   : > { %v723_v11 = vpop.f32.mrb[10].mxu1 }
 0x71d   : > { %v775_v12 = vadd.f32 %v770_v9, %v1429_v0  ;;  %v957_v13 = vpop.f32.mrb[11].mxu1 }
 0x71f   : > { %776 = vst.msk [vmem:[%s241_s26] sm:$0xff] %vm244_vm0, %v775_v12 }
 0x720   : > { %1151 = shalt.err (!%p1148_p2)
}
 0x721   : > { %s1152_s29 = scalar_lea.hbm %s1480_s28, 128  ;;  %s1156_s23 = scalar_lea.hbm %s1529_s4, 256 }
 0x722   : > { %p1153_p13 = scmp.ne.s32.totalorder %s1480_s28, %s1152_s29  ;;  %p1157_p4 = scmp.lt.u32.totalorder %s1480_s28, %s1529_s4 }
 0x723   : > { %p1158_p5 = scmp.lt.u32.totalorder %s1156_s23, %s1152_s29  ;;  %p1160_p11 = scmp.lt.u32.totalorder %s1152_s29, %s1480_s28 }
 0x724   : > { %p1154_p6 = pnand %p1153_p13, %p1543_p0 }
 0x725   : > { %p1159_p8 = por %p1158_p5, %p1157_p4 }
 0x726   : > { %p1155_p10 = pneg %p1154_p6 }
 0x727   : > { %p1161_p1 = por %p1160_p11, %p1159_p8 }
 0x729   : > { %p1162_p3 = pnand %p1161_p1, %p1155_p10 }
 0x72b   : > { %1165 = shalt.err (!%p1162_p3)
}
 0x72c   : > { %974 = dma.vmem_to_hbm [thread:$0]  (%p1543_p0), %s1482_s10, 128, %s1480_s28, %s778_s19  }
 0x72d PF: > { %s803_s5 = sand.u32 1, %s1196_s15   ;;  %p1544_p7 = scmp.ne.s32.totalorder %s1534_s22, 0 }
 0x72e   : > { %p1545_p9 = scmp.ge.s32.totalorder %s1208_s18, 2  ;;  %s804_s6 = scalar_lea.sflag [#allocation4], %s803_s5 }
 0x730   : > { %p988_p12 = pnand %p1545_p9, %p1544_p7 }
 0x732   : > { %1191 = dma.done.wait (!%p988_p12), %s804_s6, 128  }
 0x733   : > { %1193 = vsyncadd (!%p988_p12), %s804_s6, 4294967168  ;;  %p18_p2 = scmp.ge.s32.totalorder %s1356_s9, 4   ;;  %s1546_s15 = smov %s1200_s16 }
 0x734   : > { %s1547_s16 = smov %s1204_s17  ;;  %s1548_s17 = smov %s1372_s14 }
 0x735   : > { %s1549_s18 = smov %s1356_s9  ;;  %20 = sbr.rel (!%p18_p2) target bundleno = 6 (0x6), region = 90 }
 0x73c   :  { %809 = vsyncpa [#allocation3], 1 }
 0x73d   :  { %811 = vsyncpa [#allocation3 + $0x1], 1 }
 0x73e   :  { %812 = vsyncpa [#allocation6], 1 }
 0x73f   :  { %813 = vsyncpa [#allocation4], 1 }
 0x740   :  { %815 = vsyncpa [#allocation4 + $0x1], 1 }

</bundles_post_ra>
